<compile_context>
chip_gen: v7x
topology: tpu7x:2x2x1
jax: 0.10.0
libtpu: 0.0.40
codegen_flags: <defaults>
</compile_context>

<pallas_src>
import jax
import jax.numpy as jnp
from jax.experimental import pallas as pl
from jax.experimental.pallas import tpu as pltpu


def _round_up(n, m):
    return ((n + m - 1) // m) * m


def _mlp_kernel(x_ref, y_ref, w1_ref, b1_ref, w2_ref, b2_ref, out_ref, xy_ref):
    tb = x_ref.shape[0]
    dx = x_ref.shape[1]
    dy = y_ref.shape[1]
    dp = xy_ref.shape[1]
    pad_w = dp - dx - dy

    # Fused concat: pack x | y | zeros into the (TB, DP) bf16 scratch.
    xy_ref[:, pl.ds(0, dx)] = x_ref[...]
    xy_ref[:, pl.ds(dx, dy)] = y_ref[...]
    if pad_w:  # re-zero pad lanes every step (megacore-safe, exact math)
        xy_ref[:, pl.ds(dx + dy, pad_w)] = jnp.zeros((tb, pad_w), jnp.bfloat16)

    # Layer 1: single MXU dot over the packed input, f32 accumulation.
    h = jnp.dot(xy_ref[...], w1_ref[...], preferred_element_type=jnp.float32)
    h = jnp.maximum(h + b1_ref[...], 0.0)          # bias + ReLU in f32

    # Layer 2: bf16 operand, f32 accumulation, f32 bias and output.
    o = jnp.dot(h.astype(jnp.bfloat16), w2_ref[...],
                preferred_element_type=jnp.float32)
    out_ref[...] = (o + b2_ref[...]).astype(out_ref.dtype)


def domain_discriminator_cada(x, y, w1, b1, w2, b2, *, block_b=8192):
    """x: (B, input_dim), y: (B, num_classes) -> (B, 2).

    w1: (input_dim + num_classes, hidden), b1: (hidden,)
    w2: (hidden, 2),                       b2: (2,)
    (weights stored as (in_features, out_features), i.e. transposed vs PyTorch)
    """
    B, input_dim = x.shape
    num_classes = y.shape[1]
    d_in, hidden = w1.shape
    assert d_in == input_dim + num_classes
    n_out = w2.shape[1]

    # Pad the packed-input dim and the hidden dim to full 128-lane tiles.
    # Zero rows/cols are exact (they only ever multiply against zeros).
    DP = _round_up(d_in, 128)
    HP = _round_up(hidden, 128)

    w1p = (jnp.zeros((DP, HP), jnp.float32)
           .at[:d_in, :hidden].set(w1)).astype(jnp.bfloat16)
    b1p = jnp.zeros((1, HP), jnp.float32).at[0, :hidden].set(b1)
    w2p = jnp.pad(w2, ((0, HP - hidden), (0, 0))).astype(jnp.bfloat16)
    b2p = b2.reshape(1, n_out).astype(jnp.float32)

    # bf16 activations for the HBM path (halves read traffic); math stays
    # f32-accumulated inside the kernel.
    xb = x.astype(jnp.bfloat16)
    yb = y.astype(jnp.bfloat16)

    # Batch tile: large tiles amortize per-grid-step overhead, but always aim
    # for >= 2 grid steps so the "parallel" axis can shard across v7x's 2 TCs.
    if B <= 8:
        TB = B                                  # too small to split (sublane=8)
    else:
        TB = min(block_b, _round_up(pl.cdiv(B, 2), 8))
    grid = (pl.cdiv(B, TB),)

    weight_bytes = 2 * (w1p.size + w2p.size) + 4 * (b1p.size + b2p.size)
    cost = pl.CostEstimate(
        flops=2 * B * (DP * HP + HP * n_out),
        transcendentals=0,
        bytes_accessed=2 * B * (input_dim + num_classes)
        + 4 * B * n_out + weight_bytes,
    )

    out = pl.pallas_call(
        _mlp_kernel,
        out_shape=jax.ShapeDtypeStruct((B, n_out), jnp.float32),
        grid_spec=pltpu.PrefetchScalarGridSpec(
            num_scalar_prefetch=0,
            grid=grid,
            in_specs=[
                pl.BlockSpec((TB, input_dim),   lambda i: (i, 0)),  # x tile
                pl.BlockSpec((TB, num_classes), lambda i: (i, 0)),  # y tile
                pl.BlockSpec((DP, HP),          lambda i: (0, 0)),  # W1 (resident)
                pl.BlockSpec((1, HP),           lambda i: (0, 0)),  # b1 (resident)
                pl.BlockSpec((HP, n_out),       lambda i: (0, 0)),  # W2 (resident)
                pl.BlockSpec((1, n_out),        lambda i: (0, 0)),  # b2 (resident)
            ],
            out_specs=pl.BlockSpec((TB, n_out), lambda i: (i, 0)),
            scratch_shapes=[pltpu.VMEM((TB, DP), jnp.bfloat16)],    # packed x|y
        ),
        compiler_params=pltpu.CompilerParams(
            dimension_semantics=("parallel",),
            vmem_limit_bytes=48 * 1024 * 1024,
        ),
        cost_estimate=cost,
    )(xb, yb, w1p, b1p, w2p, b2p)
    return out


def init_params(key, input_dim, num_classes, hidden=100, out=2):
    """Deterministic PyTorch-style (uniform +-1/sqrt(fan_in)) init.
    Weights stored as (in_features, out_features)."""
    d_in = input_dim + num_classes
    k1, k2, k3, k4 = jax.random.split(key, 4)
    lim1 = 1.0 / jnp.sqrt(jnp.float32(d_in))
    lim2 = 1.0 / jnp.sqrt(jnp.float32(hidden))
    w1 = jax.random.uniform(k1, (d_in, hidden), jnp.float32, -lim1, lim1)
    b1 = jax.random.uniform(k2, (hidden,), jnp.float32, -lim1, lim1)
    w2 = jax.random.uniform(k3, (hidden, out), jnp.float32, -lim2, lim2)
    b2 = jax.random.uniform(k4, (out,), jnp.float32, -lim2, lim2)
    return w1, b1, w2, b2


def _reference(x, y, w1, b1, w2, b2):
    xy = jnp.concatenate([x, y], axis=1)
    return jnp.maximum(xy @ w1 + b1, 0.0) @ w2 + b2


if __name__ == "__main__":
    key = jax.random.PRNGKey(0)
    B, input_dim, num_classes = 8, 32, 4

    kx, ky, kp = jax.random.split(key, 3)
    x = jax.random.normal(kx, (B, input_dim), jnp.float32)
    # one-hot-ish class conditioning vector (any float (B, C) tensor is valid)
    y = jax.nn.one_hot(jax.random.randint(ky, (B,), 0, num_classes), num_classes,
                       dtype=jnp.float32)

    w1, b1, w2, b2 = init_params(kp, input_dim, num_classes)

    out = jax.block_until_ready(domain_discriminator_cada(x, y, w1, b1, w2, b2))
    ref = _reference(x, y, w1, b1, w2, b2)
    assert out.shape == (B, 2)
    # bf16 operands + f32 accumulation -> relaxed tolerance vs. the f32 reference.
    assert jnp.allclose(out, ref, atol=2e-2, rtol=2e-2)

    # Also exercise the multi-step grid (2 steps) and tail-padding path once.
    B2 = 24
    x2 = jax.random.normal(kx, (B2, input_dim), jnp.float32)
    y2 = jax.nn.one_hot(jax.random.randint(ky, (B2,), 0, num_classes), num_classes,
                        dtype=jnp.float32)
    out2 = jax.block_until_ready(domain_discriminator_cada(x2, y2, w1, b1, w2, b2))
    ref2 = _reference(x2, y2, w1, b1, w2, b2)
    assert out2.shape == (B2, 2)
    assert jnp.allclose(out2, ref2, atol=2e-2, rtol=2e-2)

    print("KERNEL_OK")
</pallas_src>

<mosaic_0001>
module attributes {stable_mosaic.version = 11 : i64} {
  func.func @_mlp_kernel(%arg0: i32, %arg1: memref<8x32xbf16, #tpu.memory_space<vmem>>, %arg2: memref<8x4xbf16, #tpu.memory_space<vmem>>, %arg3: memref<128x128xbf16, #tpu.memory_space<vmem>>, %arg4: memref<1x128xf32, #tpu.memory_space<vmem>>, %arg5: memref<128x2xbf16, #tpu.memory_space<vmem>>, %arg6: memref<1x2xf32, #tpu.memory_space<vmem>>, %arg7: memref<8x2xf32, #tpu.memory_space<vmem>>, %arg8: memref<8x128xbf16, #tpu.memory_space<vmem>>) attributes {dimension_semantics = [#tpu.dimension_semantics<parallel>], iteration_bounds = array<i64: 1>, scalar_prefetch = 0 : i64, scratch_operands = 1 : i64, tpu.core_type = #tpu.core_type<tc>, window_params = [{transform_indices = @transform_0, window_bounds = array<i64: 8, 32>}, {transform_indices = @transform_1, window_bounds = array<i64: 8, 4>}, {pipeline_mode = #tpu.pipeline_mode<synchronous>, transform_indices = @transform_2, window_bounds = array<i64: 128, 128>}, {pipeline_mode = #tpu.pipeline_mode<synchronous>, transform_indices = @transform_3, window_bounds = array<i64: 1, 128>}, {pipeline_mode = #tpu.pipeline_mode<synchronous>, transform_indices = @transform_4, window_bounds = array<i64: 128, 2>}, {pipeline_mode = #tpu.pipeline_mode<synchronous>, transform_indices = @transform_5, window_bounds = array<i64: 1, 2>}, {transform_indices = @transform_6, window_bounds = array<i64: 8, 2>}]} {
    %c0 = arith.constant 0 : index
    %c0_0 = arith.constant 0 : index
    %0 = vector.load %arg1[%c0, %c0_0] : memref<8x32xbf16, #tpu.memory_space<vmem>>, vector<8x32xbf16>
    %c0_1 = arith.constant 0 : index
    %c0_2 = arith.constant 0 : index
    %1 = vector.load %arg8[%c0_1, %c0_2] : memref<8x128xbf16, #tpu.memory_space<vmem>>, vector<8x32xbf16>
    tpu.vector_store %arg8[%c0_1, %c0_2], %0 {strides = array<i32>} : memref<8x128xbf16, #tpu.memory_space<vmem>>, vector<8x32xbf16>,
    %c0_3 = arith.constant 0 : index
    %c0_4 = arith.constant 0 : index
    %2 = vector.load %arg2[%c0_3, %c0_4] : memref<8x4xbf16, #tpu.memory_space<vmem>>, vector<8x4xbf16>
    %c0_5 = arith.constant 0 : index
    %c32 = arith.constant 32 : index
    %3 = vector.load %arg8[%c0_5, %c32] : memref<8x128xbf16, #tpu.memory_space<vmem>>, vector<8x4xbf16>
    tpu.vector_store %arg8[%c0_5, %c32], %2 {strides = array<i32>} : memref<8x128xbf16, #tpu.memory_space<vmem>>, vector<8x4xbf16>,
    %cst = arith.constant 0.000000e+00 : bf16
    %4 = vector.broadcast %cst : bf16 to vector<8x92xbf16>
    %c0_6 = arith.constant 0 : index
    %c36 = arith.constant 36 : index
    %5 = vector.load %arg8[%c0_6, %c36] : memref<8x128xbf16, #tpu.memory_space<vmem>>, vector<8x92xbf16>
    tpu.vector_store %arg8[%c0_6, %c36], %4 {strides = array<i32>} : memref<8x128xbf16, #tpu.memory_space<vmem>>, vector<8x92xbf16>,
    %c0_7 = arith.constant 0 : index
    %c0_8 = arith.constant 0 : index
    %6 = vector.load %arg8[%c0_7, %c0_8] : memref<8x128xbf16, #tpu.memory_space<vmem>>, vector<8x128xbf16>
    %c0_9 = arith.constant 0 : index
    %c0_10 = arith.constant 0 : index
    %7 = vector.load %arg3[%c0_9, %c0_10] : memref<128x128xbf16, #tpu.memory_space<vmem>>, vector<128x128xbf16>
    %cst_11 = arith.constant dense<0.000000e+00> : vector<8x128xf32>
    %8 = tpu.matmul %6, %7, %cst_11 {dimension_numbers = #tpu.dot_dimension_numbers<[1], [0], [0], [1], [0, 0, 1, 1], [], []>} : vector<8x128xbf16>, vector<128x128xbf16>, vector<8x128xf32> -> vector<8x128xf32>
    %c0_12 = arith.constant 0 : index
    %c0_13 = arith.constant 0 : index
    %9 = vector.load %arg4[%c0_12, %c0_13] : memref<1x128xf32, #tpu.memory_space<vmem>>, vector<1x128xf32>
    %10 = vector.broadcast %9 : vector<1x128xf32> to vector<8x128xf32>
    %11 = arith.addf %8, %10 : vector<8x128xf32>
    %cst_14 = arith.constant 0.000000e+00 : f32
    %12 = vector.broadcast %cst_14 : f32 to vector<8x128xf32>
    %13 = arith.maximumf %11, %12 : vector<8x128xf32>
    %14 = arith.truncf %13 : vector<8x128xf32> to vector<8x128xbf16>
    %c0_15 = arith.constant 0 : index
    %c0_16 = arith.constant 0 : index
    %15 = vector.load %arg5[%c0_15, %c0_16] : memref<128x2xbf16, #tpu.memory_space<vmem>>, vector<128x2xbf16>
    %cst_17 = arith.constant dense<0.000000e+00> : vector<8x2xf32>
    %16 = tpu.matmul %14, %15, %cst_17 {dimension_numbers = #tpu.dot_dimension_numbers<[1], [0], [0], [1], [0, 0, 1, 1], [], []>} : vector<8x128xbf16>, vector<128x2xbf16>, vector<8x2xf32> -> vector<8x2xf32>
    %c0_18 = arith.constant 0 : index
    %c0_19 = arith.constant 0 : index
    %17 = vector.load %arg6[%c0_18, %c0_19] : memref<1x2xf32, #tpu.memory_space<vmem>>, vector<1x2xf32>
    %18 = vector.broadcast %17 : vector<1x2xf32> to vector<8x2xf32>
    %19 = arith.addf %16, %18 : vector<8x2xf32>
    %c0_20 = arith.constant 0 : index
    %c0_21 = arith.constant 0 : index
    %20 = vector.load %arg7[%c0_20, %c0_21] : memref<8x2xf32, #tpu.memory_space<vmem>>, vector<8x2xf32>
    tpu.vector_store %arg7[%c0_20, %c0_21], %19 {strides = array<i32>} : memref<8x2xf32, #tpu.memory_space<vmem>>, vector<8x2xf32>,
    return
  }
  func.func @transform_0(%arg0: i32) -> (i32, i32) {
    %c0_i32 = arith.constant 0 : i32
    %c0_i32_0 = arith.constant 0 : i32
    return %arg0, %c0_i32 : i32, i32
  }
  func.func @transform_1(%arg0: i32) -> (i32, i32) {
    %c0_i32 = arith.constant 0 : i32
    %c0_i32_0 = arith.constant 0 : i32
    return %arg0, %c0_i32 : i32, i32
  }
  func.func @transform_2(%arg0: i32) -> (i32, i32) {
    %c0_i32 = arith.constant 0 : i32
    %c0_i32_0 = arith.constant 0 : i32
    %c0_i32_1 = arith.constant 0 : i32
    return %c0_i32, %c0_i32_0 : i32, i32
  }
  func.func @transform_3(%arg0: i32) -> (i32, i32) {
    %c0_i32 = arith.constant 0 : i32
    %c0_i32_0 = arith.constant 0 : i32
    %c0_i32_1 = arith.constant 0 : i32
    return %c0_i32, %c0_i32_0 : i32, i32
  }
  func.func @transform_4(%arg0: i32) -> (i32, i32) {
    %c0_i32 = arith.constant 0 : i32
    %c0_i32_0 = arith.constant 0 : i32
    %c0_i32_1 = arith.constant 0 : i32
    return %c0_i32, %c0_i32_0 : i32, i32
  }
  func.func @transform_5(%arg0: i32) -> (i32, i32) {
    %c0_i32 = arith.constant 0 : i32
    %c0_i32_0 = arith.constant 0 : i32
    %c0_i32_1 = arith.constant 0 : i32
    return %c0_i32, %c0_i32_0 : i32, i32
  }
  func.func @transform_6(%arg0: i32) -> (i32, i32) {
    %c0_i32 = arith.constant 0 : i32
    %c0_i32_0 = arith.constant 0 : i32
    return %arg0, %c0_i32 : i32, i32
  }
}

</mosaic_0001>

<bundles_post_ra>
// kernel: tpu_custom_call.1
= control target key start
LH: loop header
LB: loop body
LE: loop exit
PB: predicated region body
PF: predicated region fallthrough
CT: control target
= control target key end

     0   :  { %v363_v1 = vmov 0.0   ;;  %s364_s23 = smov 32   ;;  %vm365_vm0 = vmmov 0   ;;  %vm25_vm1 = vcmask 257024   ;;  %vm32_vm2 = vcmask 290048   ;;  %s483_s1 = inlined_call_operand.vmem [shape: bf16[8,4], index: 1, kind: input, shape index: {}]   ;;  %s484_s2 = inlined_call_operand.vmem [shape: bf16[128,128], index: 2, kind: input, shape index: {}]   ;;  %s485_s0 = inlined_call_operand.vmem [shape: bf16[8,32], index: 0, kind: input, shape index: {}]   ;;  %s486_s4 = inlined_call_operand.vmem [shape: bf16[128,2], index: 4, kind: input, shape index: {}]   ;;  %s487_s3 = inlined_call_operand.vmem [shape: f32[1,128], index: 3, kind: input, shape index: {}]   ;;  %s488_s5 = inlined_call_operand.vmem [shape: f32[1,2], index: 5, kind: input, shape index: {}]   ;;  %s489_s6 = inlined_call_operand.vmem [shape: f32[8,2], index: 6, kind: output, shape index: {}]  }
   0x1   :  { %v27_v0 = vld [vmem:[%s483_s1] sm:$0xf]  ;;  %303 = vmatprep.subr.bf16.mxu0 %v363_v1  ;;  %323 = vmatprep.subr.bf16.mxu1 %v363_v1  ;;  %v348_v3 = vld [vmem:[%s484_s2 + $0x8] sm:$0xff]   ;;  %v349_v5 = vld [vmem:[%s484_s2 + $0x10] sm:$0xff]   ;;  %vm34_vm3 = vcmask 1043744   ;;  %v366_v18 = vmov 0  }
   0x2   :  { %29 = vrot.lane.b32.xlu0 %v27_v0, %s364_s23  ;;  %v347_v2 = vld [vmem:[%s484_s2] sm:$0xff]   ;;  %319 = vmatprep.mubr.msk.bf16.mxu0 %vm365_vm0, %v363_v1  ;;  %v350_v7 = vld [vmem:[%s484_s2 + $0x18] sm:$0xff]   ;;  %v356_v8 = vld [vmem:[%s486_s4 + $0x8] sm:$0xff]   ;;  %vm261_vm4 = vcmask 15360  }
   0x3   :  { %304 = vmatpush3.bf16.msra.mxu0 %v347_v2  ;;  %339 = vmatprep.mubr.msk.bf16.mxu1 %vm365_vm0, %v363_v1  ;;  %v24_v4 = vld [vmem:[%s485_s0] sm:$0xf]  ;;  %v357_v10 = vld [vmem:[%s486_s4 + $0x10] sm:$0xff]   ;;  %v352_v11 = vld [vmem:[%s484_s2 + $0x28] sm:$0xff]  }
   0x4   :  { %305 = vmatprep.subr.bf16.mxu0 %v363_v1  ;;  %26 = vst.msk [vmem:[#allocation2] sm:$0xf] %vm25_vm1, %v24_v4  ;;  %v355_v6 = vld [vmem:[%s486_s4] sm:$0xff]   ;;  %v358_v12 = vld [vmem:[%s486_s4 + $0x18] sm:$0xff]   ;;  %v353_v13 = vld [vmem:[%s484_s2 + $0x30] sm:$0xff]  }
   0x5   :  { %324 = vmatpush3.bf16.msra.mxu1 %v355_v6  ;;  %v351_v9 = vld [vmem:[%s484_s2 + $0x20] sm:$0xff]   ;;  %v354_v15 = vld [vmem:[%s484_s2 + $0x38] sm:$0xff]   ;;  %v360_v16 = vld [vmem:[%s486_s4 + $0x28] sm:$0xff]  }
   0x6   :  { %325 = vmatprep.subr.bf16.mxu1 %v363_v1  ;;  %v359_v14 = vld [vmem:[%s486_s4 + $0x20] sm:$0xff]   ;;  %v361_v20 = vld [vmem:[%s486_s4 + $0x30] sm:$0xff]   ;;  %v362_v21 = vld [vmem:[%s486_s4 + $0x38] sm:$0xff]  }
   0x7   :  { %306 = vmatpush3.bf16.msra.mxu0 %v348_v3  ;;  %v267_v22 = vld [vmem:[%s487_s3] ss:$0 sm:$0xff] }
   0x8   :  { %307 = vmatprep.subr.bf16.mxu0 %v363_v1  ;;  %v276_v30 = vld [vmem:[%s488_s5] ss:$0 sm:$0xff] }
   0x9   :  { %326 = vmatpush3.bf16.msra.mxu1 %v356_v8 }
   0xa   :  { %327 = vmatprep.subr.bf16.mxu1 %v363_v1 }
   0xb   :  { %308 = vmatpush3.bf16.msra.mxu0 %v349_v5 }
   0xc   :  { %309 = vmatprep.subr.bf16.mxu0 %v363_v1 }
   0xd   :  { %328 = vmatpush3.bf16.msra.mxu1 %v357_v10 }
   0xe   :  { %329 = vmatprep.subr.bf16.mxu1 %v363_v1 }
   0xf   :  { %310 = vmatpush3.bf16.msra.mxu0 %v350_v7 }
  0x10   :  { %311 = vmatprep.subr.bf16.mxu0 %v363_v1 }
  0x11   :  { %330 = vmatpush3.bf16.msra.mxu1 %v358_v12 }
  0x12   :  { %331 = vmatprep.subr.bf16.mxu1 %v363_v1 }
  0x13   :  { %312 = vmatpush3.bf16.msra.mxu0 %v351_v9 }
  0x14   :  { %313 = vmatprep.subr.bf16.mxu0 %v363_v1 }
  0x15   :  { %332 = vmatpush3.bf16.msra.mxu1 %v359_v14 }
  0x16   :  { %333 = vmatprep.subr.bf16.mxu1 %v363_v1 }
  0x17   :  { %314 = vmatpush3.bf16.msra.mxu0 %v352_v11 }
  0x18   :  { %315 = vmatprep.subr.bf16.mxu0 %v363_v1 }
  0x19   :  { %334 = vmatpush3.bf16.msra.mxu1 %v360_v16 }
  0x1a   :  { %335 = vmatprep.subr.bf16.mxu1 %v363_v1 }
  0x1b   :  { %316 = vmatpush3.bf16.msra.mxu0 %v353_v13 }
  0x1c   :  { %317 = vmatprep.subr.bf16.mxu0 %v363_v1 }
  0x1d   :  { %336 = vmatpush3.bf16.msra.mxu1 %v361_v20 }
  0x1e   :  { %337 = vmatprep.subr.bf16.mxu1 %v363_v1 }
  0x1f   :  { %318 = vmatpush3.bf16.msra.mxu0 %v354_v15 }
  0x21   :  { %338 = vmatpush3.bf16.msra.mxu1 %v362_v21 }
  0x74   :  { %v30_v17 = vpop.permute.xlu0 %29 }
  0x75   :  { %33 = vst.msk [vmem:[#allocation2] sm:$0xf] %vm32_vm2, %v30_v17 }
  0x76   :  { %35 = vst.msk [vmem:[#allocation2] sm:$0xf] %vm34_vm3, %v366_v18 }
  0x7d   :  { %v36_v19 = vld [vmem:[#allocation2] sm:$0xf] }
  0x7e   :  { %320 = vmatmul.mubr.bf16.vlgmr.msra.gmra.mrb[0].mxu0 %v36_v19 }
 0x151   :  { %v142_v23 = vpop.f32.mrb[0].mxu0 }
 0x152   :  { %v143_v24 = vadd.f32 %v267_v22, %v142_v23  ;;  %v321_v25 = vpop.f32.mrb[1].mxu0 }
 0x153   :  { %v145_v26 = vpop.f32.mrb[2].mxu0 }
 0x154   :  { %v148_v27 = vmax.f32 %v143_v24, 0.0  ;;  %v322_v28 = vpop.f32.mrb[3].mxu0 }
 0x156   :  { %v149_v29 = vpack.c.bf16 %v148_v27, %v148_v27 }
 0x158   :  { %340 = vmatmul.mubr.bf16.vlgmr.msra.gmra.mrb[0].mxu1 %v149_v29 }
 0x22b   :  { %v255_v31 = vpop.f32.mrb[0].mxu1 }
 0x22c   :  { %v256_v32 = vadd.f32 %v276_v30, %v255_v31  ;;  %v341_v33 = vpop.f32.mrb[1].mxu1 }
 0x22d   :  { %v258_v34 = vpop.f32.mrb[2].mxu1 }
 0x22e   :  { %262 = vst.msk [vmem:[%s489_s6] sm:$0xff] %vm261_vm4, %v256_v32  ;;  %v342_v35 = vpop.f32.mrb[3].mxu1 }

</bundles_post_ra>
